<compile_context>
chip_gen: v7x
topology: tpu7x:2x2x1
jax: 0.10.0
libtpu: 0.0.40
codegen_flags: <defaults>
</compile_context>

<pallas_src>
import jax
import jax.numpy as jnp
import numpy as np
from jax.experimental import pallas as pl
from jax.experimental.pallas import tpu as pltpu

_EPS = 1e-12              # F.normalize default eps
_EPS_SQ = _EPS * _EPS     # clamp on squared norms (sqrt is monotone, so
                          # max(sqrt(x), eps) == sqrt(max(x, eps^2)))


def _deschyp_kernel(w_ref, e_ref, o_ref):
    # w_ref: (TB, S, D) word vectors
    # e_ref: (TB, D)    entity vectors
    # o_ref: (TB, S)    lane-dense per-word dot with normalized entity vec
    w = w_ref[...]
    e = e_ref[...]

    # Raw dot and squared norms (two multiply-reduce passes over (TB,S,D)).
    raw = jnp.sum(w * e[:, None, :], axis=-1)          # (TB, S)
    w_sq = jnp.sum(w * w, axis=-1)                     # (TB, S)
    e_sq = jnp.sum(e * e, axis=-1, keepdims=True)      # (TB, 1)

    # Per-row scale on the EUP (rsqrt) instead of sqrt + VALU divide.
    inv_w = jax.lax.rsqrt(jnp.maximum(w_sq, _EPS_SQ))  # (TB, S)
    inv_e = jax.lax.rsqrt(jnp.maximum(e_sq, _EPS_SQ))  # (TB, 1)

    o_ref[...] = raw * inv_w * inv_e


def _choose_batch_tile(B, S, D, target_bytes=4 << 20):
    """Pick a batch tile so double-buffered f32 inputs stay ~few MiB (fits v7x)."""
    rows = max(1, target_bytes // max(1, S * D * 4))
    tb = min(B, rows)
    if tb < B:
        # Leading dim of the 2-D entity/output blocks must be sublane-aligned
        # when it is not the full extent.
        tb = max(8, (tb // 8) * 8)
    return tb


def desc_hyp_embed_forward(word_embed_table, entity_embed_table,
                           word_ids, entity_ids):
    """word_ids: (B, S) int32, entity_ids: (B,) int32 -> (B, S, 1) float32."""
    # Glue: embedding lookups (pure gather) in plain JAX.
    w = word_embed_table[word_ids].astype(jnp.float32)       # (B, S, D)
    e = entity_embed_table[entity_ids].astype(jnp.float32)   # (B, D)
    B, S, D = w.shape

    TB = _choose_batch_tile(B, S, D)
    B_pad = pl.cdiv(B, TB) * TB
    if B_pad != B:
        w = jnp.pad(w, ((0, B_pad - B), (0, 0), (0, 0)))
        e = jnp.pad(e, ((0, B_pad - B), (0, 0)))

    out = pl.pallas_call(
        _deschyp_kernel,
        out_shape=jax.ShapeDtypeStruct((B_pad, S), jnp.float32),
        grid=(B_pad // TB,),
        in_specs=[
            pl.BlockSpec((TB, S, D), lambda b: (b, 0, 0)),
            pl.BlockSpec((TB, D), lambda b: (b, 0)),
        ],
        out_specs=pl.BlockSpec((TB, S), lambda b: (b, 0)),
        compiler_params=pltpu.CompilerParams(
            dimension_semantics=("parallel",)),
    )(w, e)

    # bmm(..., entity.view(-1, D, 1)) has a trailing singleton dim; add it
    # back with a free reshape outside the kernel.
    return out[:B, :, None]


def _reference(word_embed_table, entity_embed_table, word_ids, entity_ids):
    w = word_embed_table[word_ids].astype(jnp.float32)
    e = entity_embed_table[entity_ids].astype(jnp.float32)
    wn = w / jnp.maximum(jnp.linalg.norm(w, axis=2, keepdims=True), _EPS)
    en = e / jnp.maximum(jnp.linalg.norm(e, axis=1, keepdims=True), _EPS)
    return jnp.einsum("bsd,bd->bs", wn, en)[..., None]


if __name__ == "__main__":
    # Deterministic synthetic "pretrained" embedding tables.
    key = jax.random.PRNGKey(0)
    k_word, k_ent, k_wid, k_eid = jax.random.split(key, 4)

    vocab_size = 20
    n_entities = 6
    dim = 32          # embedding dim D
    batch = 2
    seq = 8

    word_vecs_table = jax.random.normal(k_word, (vocab_size, dim),
                                        dtype=jnp.float32)
    init_entity_vecs = jax.random.normal(k_ent, (n_entities, dim),
                                         dtype=jnp.float32)

    word_ids = jax.random.randint(k_wid, (batch, seq), 0, vocab_size,
                                  dtype=jnp.int32)
    entity_ids = jax.random.randint(k_eid, (batch,), 0, n_entities,
                                    dtype=jnp.int32)

    out = desc_hyp_embed_forward(word_vecs_table, init_entity_vecs,
                                 word_ids, entity_ids)
    out = jax.block_until_ready(out)

    ref = _reference(word_vecs_table, init_entity_vecs, word_ids, entity_ids)
    np.testing.assert_allclose(np.asarray(out), np.asarray(ref),
                               rtol=1e-5, atol=1e-5)
    assert out.shape == (batch, seq, 1)
    print("KERNEL_OK")
</pallas_src>

<mosaic_0001>
module attributes {stable_mosaic.version = 11 : i64} {
  func.func @_deschyp_kernel(%arg0: i32, %arg1: memref<2x8x32xf32, #tpu.memory_space<vmem>>, %arg2: memref<2x32xf32, #tpu.memory_space<vmem>>, %arg3: memref<2x8xf32, #tpu.memory_space<vmem>>) attributes {dimension_semantics = [#tpu.dimension_semantics<parallel>], iteration_bounds = array<i64: 1>, scalar_prefetch = 0 : i64, scratch_operands = 0 : i64, tpu.core_type = #tpu.core_type<tc>, window_params = [{transform_indices = @transform_0, window_bounds = array<i64: 2, 8, 32>}, {transform_indices = @transform_1, window_bounds = array<i64: 2, 32>}, {transform_indices = @transform_2, window_bounds = array<i64: 2, 8>}]} {
    %c0 = arith.constant 0 : index
    %c0_0 = arith.constant 0 : index
    %c0_1 = arith.constant 0 : index
    %0 = vector.load %arg1[%c0, %c0_0, %c0_1] : memref<2x8x32xf32, #tpu.memory_space<vmem>>, vector<2x8x32xf32>
    %c0_2 = arith.constant 0 : index
    %c0_3 = arith.constant 0 : index
    %1 = vector.load %arg2[%c0_2, %c0_3] : memref<2x32xf32, #tpu.memory_space<vmem>>, vector<2x32xf32>
    %2 = vector.shape_cast %1 : vector<2x32xf32> to vector<2x1x32xf32>
    %3 = vector.broadcast %2 : vector<2x1x32xf32> to vector<2x8x32xf32>
    %4 = arith.mulf %0, %3 : vector<2x8x32xf32>
    %cst = arith.constant dense<0.000000e+00> : vector<2x8xf32>
    %5 = vector.multi_reduction <add>, %4, %cst [2] : vector<2x8x32xf32> to vector<2x8xf32>
    %6 = arith.mulf %0, %0 : vector<2x8x32xf32>
    %cst_4 = arith.constant dense<0.000000e+00> : vector<2x8xf32>
    %7 = vector.multi_reduction <add>, %6, %cst_4 [2] : vector<2x8x32xf32> to vector<2x8xf32>
    %8 = arith.mulf %1, %1 : vector<2x32xf32>
    %cst_5 = arith.constant dense<0.000000e+00> : vector<2xf32>
    %9 = vector.multi_reduction <add>, %8, %cst_5 [1] : vector<2x32xf32> to vector<2xf32>
    %10 = vector.shape_cast %9 : vector<2xf32> to vector<2x1xf32>
    %cst_6 = arith.constant 1.000000e-24 : f32
    %11 = vector.broadcast %cst_6 : f32 to vector<2x8xf32>
    %12 = arith.maximumf %7, %11 : vector<2x8xf32>
    %13 = math.rsqrt %12 : vector<2x8xf32>
    %cst_7 = arith.constant 1.000000e-24 : f32
    %14 = vector.broadcast %cst_7 : f32 to vector<2x1xf32>
    %15 = arith.maximumf %10, %14 : vector<2x1xf32>
    %16 = math.rsqrt %15 : vector<2x1xf32>
    %17 = arith.mulf %5, %13 : vector<2x8xf32>
    %18 = vector.broadcast %16 : vector<2x1xf32> to vector<2x8xf32>
    %19 = arith.mulf %17, %18 : vector<2x8xf32>
    %c0_8 = arith.constant 0 : index
    %c0_9 = arith.constant 0 : index
    %20 = vector.load %arg3[%c0_8, %c0_9] : memref<2x8xf32, #tpu.memory_space<vmem>>, vector<2x8xf32>
    tpu.vector_store %arg3[%c0_8, %c0_9], %19 {strides = array<i32>} : memref<2x8xf32, #tpu.memory_space<vmem>>, vector<2x8xf32>,
    return
  }
  func.func @transform_0(%arg0: i32) -> (i32, i32, i32) {
    %c0_i32 = arith.constant 0 : i32
    %c0_i32_0 = arith.constant 0 : i32
    %c0_i32_1 = arith.constant 0 : i32
    return %arg0, %c0_i32, %c0_i32_0 : i32, i32, i32
  }
  func.func @transform_1(%arg0: i32) -> (i32, i32) {
    %c0_i32 = arith.constant 0 : i32
    %c0_i32_0 = arith.constant 0 : i32
    return %arg0, %c0_i32 : i32, i32
  }
  func.func @transform_2(%arg0: i32) -> (i32, i32) {
    %c0_i32 = arith.constant 0 : i32
    %c0_i32_0 = arith.constant 0 : i32
    return %arg0, %c0_i32 : i32, i32
  }
}

</mosaic_0001>

<bundles_post_ra>
// kernel: tpu_custom_call.1
= control target key start
LH: loop header
LB: loop body
LE: loop exit
PB: predicated region body
PF: predicated region fallthrough
CT: control target
= control target key end

     0   :  { %7 = vsyncpa [#allocation3], 0  ;;  %s257_s0 = inlined_call_operand.hbm [shape: f32[2,8,32], index: 0, kind: input, shape index: {}]   ;;  %s258_s1 = inlined_call_operand.vmem [shape: f32[2,32], index: 1, kind: input, shape index: {}]   ;;  %s259_s2 = inlined_call_operand.hbm [shape: f32[2,8], index: 2, kind: output, shape index: {}]  }
   0x1   :  { %8 = vsyncpa [#allocation4], 0  ;;  %s205_s9 = smov [#allocation2]   ;;  %s157_s13 = scalar_lea.hbm %s257_s0, 256 }
   0x2   :  { %s14_s10 = sshll.u32 %s205_s9, 4  ;;  %p158_p0 = scmp.ne.s32.totalorder %s257_s0, %s157_s13  ;;  %s15_s10 = int_to_ptr.vmem [resolvable:$true] %s14_s10 }
   0x3   :  { %p161_p1 = scmp.lt.u32.totalorder %s157_s13, %s257_s0 }
   0x5   :  { %p163_p2 = pnand %p161_p1, %p158_p0 }
   0x7   :  { %166 = shalt.err (!%p163_p2)
}
   0x8   :  { %s167_s18 = scalar_lea.vmem %s15_s10, 256  ;;  %p172_p4 = scmp.lt.s32.totalorder %s15_s10, %s15_s10 }
   0x9   :  { %p168_p3 = scmp.ne.s32.totalorder %s15_s10, %s167_s18  ;;  %p173_p5 = scmp.lt.s32.totalorder %s167_s18, %s167_s18 }
   0xb   :  { %p174_p6 = por %p173_p5, %p172_p4 }
   0xd   :  { %p175_p7 = pnand %p174_p6, %p168_p3 }
   0xf   :  { %178 = shalt.err (!%p175_p7)
}
  0x10   :  { %s206_s19 = smov 128   ;;  %s207_s20 = smov 8  }
  0x11   :  { %20 = dma.hbm_to_vmem [thread:$0]  %s257_s0, 256, %s15_s10, [#allocation3], %s206_s19, %s206_s19, %s207_s20  }
  0x12   :  { %201 = dma.done.wait [#allocation3], 256  }
  0x13   :  { %202 = vsyncadd [#allocation3], 4294967040  ;;  %v33_v0 = vlaneseq  ;;  %v208_v1 = vmov 1966171168   ;;  %vm80_vm0 = vcmask 254976   ;;  %v26_v7 = vld [vmem:[#allocation2] sm:$0xff] }
  0x14   :  { %v31_v2 = vunpack.c.l.s4 %v208_v1  ;;  %v28_v6 = vld [vmem:[%s258_s1] sm:$0x3]  ;;  %vm64_vm1 = vcmask 261120   ;;  %v27_v8 = vld [vmem:[#allocation2 + $0x8] sm:$0xff]  ;;  %v71_v12 = vmul.f32 %v26_v7, %v26_v7  ;;  %v209_v26 = vmov 0   ;;  %s210_s0 = smov [#allocation5]  }
  0x15   :  { %v34_v3 = vshrl.u32 %v33_v0, 7  ;;  %v79_v10 = vmul.f32 %v28_v6, %v28_v6  ;;  %v72_v13 = vmul.f32 %v27_v8, %v27_v8  ;;  %149 = vset.pattern.permute.xlu1 %v209_v26  ;;  %150 = vset.pattern.permute.xlu0 %v209_v26  ;;  %v114_v27 = vand.u32 127, %v33_v0  ;;  %s134_s1 = sshll.u32 %s210_s0, 4  ;;  %s135_s1 = int_to_ptr.vmem [resolvable:$true] %s134_s1 }
  0x16   :  { %v32_v4 = vunpack.c.0.s8 %v31_v2  ;;  %v73_v17 = vsel %vm64_vm1, %v71_v12, 0.0  ;;  %vm123_vm2 = vcmask 1041409   ;;  %vm126_vm3 = vcmask 58368   ;;  %s179_s25 = scalar_lea.vmem %s135_s1, 32  ;;  %p184_p9 = scmp.lt.s32.totalorder %s135_s1, %s135_s1 }
  0x17   :  { %v54_v9 = vsub.s32 0, %v34_v3  ;;  %v81_v14 = vsel %vm80_vm0, %v79_v10, 0.0  ;;  %74 = vadd.xlane.f32.xlu0 %v73_v17  ;;  %v76_v18 = vsel %vm64_vm1, %v72_v13, 0.0  ;;  %v117_v28 = vsub.s32 %v114_v27, %v34_v3  ;;  %p180_p8 = scmp.ne.s32.totalorder %s135_s1, %s179_s25  ;;  %p185_p10 = scmp.lt.s32.totalorder %s179_s25, %s179_s25 }
  0x18   :  { %v35_v5 = vsub.s32 %v32_v4, %v34_v3  ;;  %82 = vadd.xlane.f32.xlu1 %v81_v14  ;;  %v99_v36 = vsub.s32 1, %v34_v3 }
  0x19   :  { %p186_p11 = por %p185_p10, %p184_p9 }
  0x1a   :  { %v36_v11 = vrot.slane %v28_v6, %v35_v5 }
  0x1b   :  { %77 = vadd.xlane.f32.xlu0 %v76_v18  ;;  %p187_p12 = pnand %p186_p11, %p180_p8 }
  0x1c   :  { %v37_v15 = vcombine.high %v36_v11, %v36_v11  ;;  %v44_v16 = vrot.slane %v36_v11, %v35_v5 }
  0x1e   :  { %v55_v19 = vrot.slane %v44_v16, %v54_v9  ;;  %v51_v20 = vrot.slane %v37_v15, %v35_v5 }
  0x20   :  { %v62_v21 = vmul.f32 %v55_v19, %v26_v7  ;;  %v59_v22 = vrot.slane %v51_v20, %v54_v9 }
  0x22   :  { %v65_v23 = vsel %vm64_vm1, %v62_v21, 0.0  ;;  %v63_v24 = vmul.f32 %v59_v22, %v27_v8 }
  0x23   :  { %66 = vadd.xlane.f32.xlu1 %v65_v23 }
  0x24   :  { %v68_v25 = vsel %vm64_vm1, %v63_v24, 0.0 }
  0x25   :  { %69 = vadd.xlane.f32.xlu0 %v68_v25 }
  0xa4   :  { %v75_v30 = vpop.xlane.xlu0 %74 }
  0xa5   :  { %v83_v29 = vpop.xlane.xlu1 %82  ;;  %v84_v32 = vmax.f32 %v75_v30, 1e-24 }
  0xa6   :  { %v88_v31 = vmax.f32 %v83_v29, 1e-24 }
  0xa8   :  { %151 = vrsqrt.f32 %v88_v31  ;;  %v78_v33 = vpop.xlane.xlu0 %77 }
  0xa9   :  { %153 = vrsqrt.f32 %v84_v32  ;;  %v85_v34 = vmax.f32 %v78_v33, 1e-24 }
  0xab   :  { %155 = vrsqrt.f32 %v85_v34 }
  0xb0   :  { %v67_v35 = vpop.xlane.xlu1 %66 }
  0xb2   :  { %v152_v37 = vpop.eup %151  ;;  %v70_v41 = vpop.xlane.xlu0 %69 }
  0xb3   :  { %v154_v38 = vpop.eup %153  ;;  %v96_v39 = vrot.slane %v152_v37, %v54_v9  ;;  %v100_v42 = vrot.slane %v152_v37, %v99_v36 }
  0xb4   :  { %v90_v40 = vmul.f32 %v154_v38, %v67_v35 }
  0xb5   :  { %v156_v43 = vpop.eup %155 }
  0xb6   :  { %v103_v44 = vmul.f32 %v96_v39, %v90_v40  ;;  %v91_v45 = vmul.f32 %v156_v43, %v70_v41 }
  0xb8   :  { %108 = vperm.xlu1 %149, %v103_v44   ;;  %v104_v46 = vmul.f32 %v100_v42, %v91_v45 }
  0xba   :  { %111 = vperm.xlu0 %150, %v104_v46  }
 0x137   :  { %v109_v47 = vpop.permute.xlu1 %108 }
 0x138   :  { %v118_v49 = vrot.slane %v109_v47, %v117_v28 }
 0x139   :  { %v112_v48 = vpop.permute.xlu0 %111 }
 0x13a   :  { %v122_v50 = vrot.slane %v112_v48, %v117_v28 }
 0x13c   :  { %v124_v51 = vsel %vm123_vm2, %v122_v50, %v118_v49 }
 0x13d   :  { %127 = vst.msk [vmem:[#allocation5] sm:$0x3] %vm126_vm3, %v124_v51 }
 0x13e   :  { %190 = shalt.err (!%p187_p12)
}
 0x13f   :  { %s191_s28 = scalar_lea.hbm %s259_s2, 32 }
 0x140   :  { %p192_p13 = scmp.ne.s32.totalorder %s259_s2, %s191_s28  ;;  %p195_p0 = scmp.lt.u32.totalorder %s191_s28, %s259_s2 }
 0x142   :  { %p197_p1 = pnand %p195_p0, %p192_p13 }
 0x144   :  { %200 = shalt.err (!%p197_p1)
}
 0x145   :  { %137 = dma.vmem_to_hbm [thread:$0]  %s135_s1, 32, %s259_s2, [#allocation4]  }
 0x146   :  { %203 = dma.done.wait [#allocation4], 32  }
 0x147   :  { %204 = vsyncadd [#allocation4], 4294967264 }
 0x148   :  { %141 = vsyncpa [#allocation3], 1 }
 0x149   :  { %142 = vsyncpa [#allocation4], 1 }

</bundles_post_ra>
